<compile_context>
chip_gen: v5e
topology: v5e:2x2
jax: 0.10.0
libtpu: 0.0.40
codegen_flags: <defaults>
</compile_context>

<pallas_src>
import jax
import jax.numpy as jnp
from jax.experimental import pallas as pl
from jax.experimental.pallas import tpu as pltpu

LANE = 128


def mish_kernel(x_ref, o_ref):
    # x_ref / o_ref : (block_rows, 128) lane-dense tiles.
    x = x_ref[...].astype(jnp.float32)

    e = jnp.exp(jnp.minimum(x, 20.0))      # single EUP op; exp(20) ~ 4.9e8, no overflow
    u = e * (e + 2.0)                      # VPU math, plenty of slot slack
    t = u / (u + 2.0)                      # == tanh(softplus(x)), exact divide
    # PyTorch softplus threshold: x > 20 -> softplus(x) = x, tanh(x) == 1 in f32.
    y = jnp.where(x > 20.0, x, x * t)

    o_ref[...] = y.astype(o_ref.dtype)


def _sublane(itemsize):
    # 8 sublanes for 4-byte dtypes, 16 for 2-byte, 32 for 1-byte (packing).
    return max(8, 32 // itemsize)


def _pick_block_rows(rows, itemsize, sublane, target_block_bytes):
    # ~4 MiB blocks: 8192 rows f32, 16384 rows bf16.
    max_rows = max(sublane, target_block_bytes // (LANE * itemsize))
    # v7x has 2 TensorCores sharing the "parallel" axis: make sure big tensors
    # produce at least 2 row tiles instead of one giant single-step grid.
    if rows >= 1024:
        max_rows = min(max_rows, pl.cdiv(rows, 2))
    block = min(rows, max_rows)
    block = max(sublane, (block // sublane) * sublane)   # keep sublane-aligned
    return block


def mish_pallas(x, *, target_block_bytes=4 * 1024 * 1024):
    """Elementwise mish on an arbitrary-shaped array via a lane-dense Pallas kernel."""
    orig_shape = x.shape
    orig_dtype = x.dtype
    itemsize = jnp.dtype(orig_dtype).itemsize
    sub = _sublane(itemsize)

    flat = x.reshape(-1)
    n = flat.shape[0]
    if n == 0:
        return x

    # Rows of 128 lanes, rounded up only to the sublane tile (NOT to a block
    # multiple) -- Pallas handles the ragged last block via the grid.
    rows = pl.cdiv(n, LANE)
    rows = pl.cdiv(rows, sub) * sub

    pad = rows * LANE - n
    if pad:
        flat = jnp.pad(flat, (0, pad))     # only for non-128*sub-aligned sizes
    x2 = flat.reshape(rows, LANE)

    block_rows = _pick_block_rows(rows, itemsize, sub, target_block_bytes)
    grid = (pl.cdiv(rows, block_rows),)

    out = pl.pallas_call(
        mish_kernel,
        out_shape=jax.ShapeDtypeStruct((rows, LANE), orig_dtype),
        grid=grid,
        in_specs=[pl.BlockSpec((block_rows, LANE), lambda i: (i, 0))],
        out_specs=pl.BlockSpec((block_rows, LANE), lambda i: (i, 0)),
        compiler_params=pltpu.CompilerParams(
            dimension_semantics=("parallel",),
            # Covers v5e's 16 MiB default scoped VMEM for the double-buffered
            # 4 MiB in + 4 MiB out working set; safe on v6e/v7x too.
            vmem_limit_bytes=32 * 1024 * 1024,
        ),
        cost_estimate=pl.CostEstimate(
            flops=5 * n,
            transcendentals=n,
            bytes_accessed=2 * n * itemsize,
        ),
    )(x2)

    flat_out = out.reshape(-1)
    if pad:
        flat_out = flat_out[:n]
    return flat_out.reshape(orig_shape)


def reference(x):
    """Pure-JAX mirror of the PyTorch forward: x * tanh(F.softplus(x))."""
    xf = x.astype(jnp.float32)
    sp = jnp.where(xf > 20.0, xf, jnp.log1p(jnp.exp(jnp.minimum(xf, 20.0))))
    return (xf * jnp.tanh(sp)).astype(x.dtype)


if __name__ == "__main__":
    key = jax.random.PRNGKey(0)

    N, C, H, W = 2, 4, 16, 16
    x = jax.random.normal(key, (N, C, H, W), dtype=jnp.float32) * 3.0
    # Exercise the softplus threshold and the strongly-negative branch.
    x = x.at[0, 0, 0, 0].set(25.0)
    x = x.at[0, 0, 0, 1].set(-25.0)
    x = x.at[0, 0, 0, 2].set(-10.0)

    out = jax.block_until_ready(mish_pallas(x))

    ref = reference(x)
    assert out.shape == x.shape, out.shape
    assert jnp.allclose(out, ref, atol=1e-4, rtol=1e-4), "mismatch vs reference"

    print("KERNEL_OK")
</pallas_src>

<mosaic_0001>
module attributes {stable_mosaic.version = 11 : i64} {
  func.func @mish_kernel(%arg0: i32, %arg1: memref<16x128xf32, #tpu.memory_space<vmem>>, %arg2: memref<16x128xf32, #tpu.memory_space<vmem>>) attributes {dimension_semantics = [#tpu.dimension_semantics<parallel>], iteration_bounds = array<i64: 1>, scalar_prefetch = 0 : i64, scratch_operands = 0 : i64, tpu.core_type = #tpu.core_type<tc>, window_params = [{transform_indices = @transform_0, window_bounds = array<i64: 16, 128>}, {transform_indices = @transform_1, window_bounds = array<i64: 16, 128>}]} {
    %c0 = arith.constant 0 : index
    %c0_0 = arith.constant 0 : index
    %0 = vector.load %arg1[%c0, %c0_0] : memref<16x128xf32, #tpu.memory_space<vmem>>, vector<16x128xf32>
    %cst = arith.constant 2.000000e+01 : f32
    %1 = vector.broadcast %cst : f32 to vector<16x128xf32>
    %2 = arith.minimumf %0, %1 : vector<16x128xf32>
    %3 = math.exp %2 : vector<16x128xf32>
    %cst_1 = arith.constant 2.000000e+00 : f32
    %4 = vector.broadcast %cst_1 : f32 to vector<16x128xf32>
    %5 = arith.addf %3, %4 : vector<16x128xf32>
    %6 = arith.mulf %3, %5 : vector<16x128xf32>
    %cst_2 = arith.constant 2.000000e+00 : f32
    %7 = vector.broadcast %cst_2 : f32 to vector<16x128xf32>
    %8 = arith.addf %6, %7 : vector<16x128xf32>
    %9 = arith.divf %6, %8 : vector<16x128xf32>
    %cst_3 = arith.constant 2.000000e+01 : f32
    %10 = vector.broadcast %cst_3 : f32 to vector<16x128xf32>
    %11 = arith.cmpf ogt, %0, %10 : vector<16x128xf32>
    %12 = arith.mulf %0, %9 : vector<16x128xf32>
    %13 = arith.select %11, %0, %12 : vector<16x128xi1>, vector<16x128xf32>
    %c0_4 = arith.constant 0 : index
    %c0_5 = arith.constant 0 : index
    %14 = vector.load %arg2[%c0_4, %c0_5] : memref<16x128xf32, #tpu.memory_space<vmem>>, vector<16x128xf32>
    tpu.vector_store %arg2[%c0_4, %c0_5], %13 {strides = array<i32>} : memref<16x128xf32, #tpu.memory_space<vmem>>, vector<16x128xf32>,
    return
  }
  func.func @transform_0(%arg0: i32) -> (i32, i32) {
    %c0_i32 = arith.constant 0 : i32
    %c0_i32_0 = arith.constant 0 : i32
    return %arg0, %c0_i32 : i32, i32
  }
  func.func @transform_1(%arg0: i32) -> (i32, i32) {
    %c0_i32 = arith.constant 0 : i32
    %c0_i32_0 = arith.constant 0 : i32
    return %arg0, %c0_i32 : i32, i32
  }
}

</mosaic_0001>

<bundles_post_ra>
// kernel: tpu_custom_call.1
= control target key start
LH: loop header
LB: loop body
LE: loop exit
PB: predicated region body
PF: predicated region fallthrough
CT: control target
= control target key end

     0   :  { %6 = vsyncpa [#allocation3], 0  ;;  %s186_s0 = inlined_call_operand.hbm [shape: f32[16,128], index: 0, kind: input, shape index: {}]   ;;  %s187_s1 = inlined_call_operand.hbm [shape: f32[16,128], index: 1, kind: output, shape index: {}]  }
   0x1   :  { %7 = vsyncpa [#allocation4], 0  ;;  %s12_s8 = sshll.u32 %s186_s0, 4  ;;  %s160_s9 = smov [#allocation2]   ;;  %s13_s8 = int_to_ptr.hbm [resolvable:$true] %s12_s8 }
   0x2   :  { %s14_s10 = sshll.u32 %s160_s9, 4  ;;  %s161_s11 = smov 128   ;;  %s15_s10 = int_to_ptr.vmem [resolvable:$true] %s14_s10 }
   0x3   :  { %s162_s12 = smov 8  }
   0x4   :  { %20 = dma.hbm_to_vmem [thread:$0]  %s13_s8, 256, %s15_s10, [#allocation3], %s161_s11, %s161_s11, %s162_s12  }
   0x5   :  { %156 = dma.done.wait [#allocation3], 256  }
   0x6   :  { %157 = vsyncadd [#allocation3], 4294967040  ;;  %v25_v0 = vld [vmem:[#allocation2] sm:$0xff]  ;;  %v26_v1 = vld [vmem:[#allocation2 + $0x8] sm:$0xff]  ;;  %s163_s0 = smov [#allocation5]   ;;  %s83_s16 = sshll.u32 %s187_s1, 4  ;;  %s84_s16 = int_to_ptr.hbm [resolvable:$true] %s83_s16 }
   0x7   :  { %v27_v2 = vmin.f32 %v25_v0, 20.0  ;;  %v28_v3 = vmin.f32 %v26_v1, 20.0  ;;  %vm69_vm8 = vcmp.gt.f32.partialorder %v25_v0, 20.0  ;;  %s81_s13 = sshll.u32 %s163_s0, 4  ;;  %vm70_vm9 = vcmp.gt.f32.partialorder %v26_v1, 20.0  ;;  %s82_s13 = int_to_ptr.vmem [resolvable:$true] %s81_s13 }
   0x9   :  { %v29_v4 = vmul.f32 1.442695, %v27_v2  ;;  %v31_v5 = vmul.f32 1.442695, %v28_v3 }
   0xb   :  { %100 = vpow2.f32 %v29_v4 }
   0xc   :  { %102 = vpow2.f32 %v31_v5 }
  0x11   :  { %v101_v6 = vpop.eup %100 }
  0x12   :  { %v103_v7 = vpop.eup %102  ;;  %v33_v8 = vadd.f32 2.0, %v101_v6 }
  0x13   :  { %v34_v9 = vadd.f32 2.0, %v103_v7 }
  0x14   :  { %v35_v10 = vmul.f32 %v101_v6, %v33_v8 }
  0x15   :  { %v36_v11 = vmul.f32 %v103_v7, %v34_v9 }
  0x16   :  { %v37_v12 = vadd.f32 2.0, %v35_v10 }
  0x17   :  { %v38_v13 = vadd.f32 2.0, %v36_v11 }
  0x18   :  { %104 = vrcp.f32 %v37_v12  ;;  %vm44_vm0 = vweird.f32 %v37_v12  ;;  %v50_v17 = vand.u32 2147483648, %v37_v12  ;;  %v48_v20 = vand.u32 2147483647, %v37_v12 }
  0x19   :  { %106 = vrcp.f32 %v38_v13  ;;  %v65_v21 = vand.u32 2147483648, %v38_v13  ;;  %vm59_vm2 = vweird.f32 %v38_v13  ;;  %v63_v23 = vand.u32 2147483647, %v38_v13 }
  0x1a   :  { %v51_v25 = vor.u32 1.1754944e-38, %v50_v17  ;;  %vm49_vm5 = vcmp.eq.f32.partialorder %v48_v20, 8.507059e+37 }
  0x1b   :  { %v66_v28 = vor.u32 1.1754944e-38, %v65_v21  ;;  %vm64_vm7 = vcmp.eq.f32.partialorder %v63_v23, 8.507059e+37 }
  0x1e   :  { %v105_v14 = vpop.eup %104 }
  0x1f   :  { %v107_v15 = vpop.eup %106  ;;  %v40_v16 = vmul.f32 %v105_v14, %v37_v12  ;;  %vm45_vm1 = vweird.f32 %v105_v14 }
  0x20   :  { %v55_v18 = vmul.f32 %v107_v15, %v38_v13  ;;  %vm60_vm3 = vweird.f32 %v107_v15  ;;  %vm46_vm4 = vmor %vm44_vm0, %vm45_vm1 }
  0x21   :  { %v41_v19 = vsub.f32 1.0, %v40_v16  ;;  %vm61_vm6 = vmor %vm59_vm2, %vm60_vm3 }
  0x22   :  { %v56_v22 = vsub.f32 1.0, %v55_v18 }
  0x23   :  { %v42_v24 = vmul.f32 %v105_v14, %v41_v19 }
  0x24   :  { %v57_v26 = vmul.f32 %v107_v15, %v56_v22 }
  0x25   :  { %v43_v27 = vadd.f32 %v105_v14, %v42_v24 }
  0x26   :  { %v58_v29 = vadd.f32 %v107_v15, %v57_v26 }
  0x27   :  { %v47_v30 = vsel %vm46_vm4, %v105_v14, %v43_v27 }
  0x28   :  { %v52_v31 = vsel %vm49_vm5, %v51_v25, %v47_v30  ;;  %v62_v32 = vsel %vm61_vm6, %v107_v15, %v58_v29 }
  0x29   :  { %v53_v33 = vmul.f32 %v52_v31, %v35_v10  ;;  %v67_v34 = vsel %vm64_vm7, %v66_v28, %v62_v32 }
  0x2a   :  { %v68_v35 = vmul.f32 %v67_v34, %v36_v11 }
  0x2b   :  { %v71_v36 = vmul.f32 %v53_v33, %v25_v0 }
  0x2c   :  { %v72_v37 = vmul.f32 %v68_v35, %v26_v1 }
  0x2d   :  { %v73_v38 = vsel %vm69_vm8, %v25_v0, %v71_v36 }
  0x2e   :  { %75 = vst [vmem:[#allocation5] sm:$0xff] %v73_v38  ;;  %v74_v39 = vsel %vm70_vm9, %v26_v1, %v72_v37 }
  0x2f   :  { %76 = vst [vmem:[#allocation5 + $0x8] sm:$0xff] %v74_v39 }
  0x30   :  { %89 = dma.vmem_to_hbm [thread:$0]  %s82_s13, 256, %s84_s16, [#allocation4], %s161_s11, %s161_s11, %s162_s12  }
  0x31   :  { %158 = dma.done.wait [#allocation4], 256  }
  0x32   :  { %159 = vsyncadd [#allocation4], 4294967040 }
  0x33   :  { %94 = vsyncpa [#allocation3], 1 }
  0x34   :  { %95 = vsyncpa [#allocation4], 1 }

</bundles_post_ra>
